<compile_context>
chip_gen: v6e
topology: v6e:2x2x1
jax: 0.10.0
libtpu: 0.0.40
codegen_flags: <defaults>
</compile_context>

<pallas_src>
import math
from functools import partial

import jax
import jax.numpy as jnp
from jax.experimental import pallas as pl
from jax.experimental.pallas import tpu as pltpu

_LANE = 128
_SUBLANE = 8


def _sum_scale_kernel(x_ref, o_ref, *, inv, axis):
    # Reduce over `axis` (the pooled dim), accumulate in f32, scale by 1/length.
    x = x_ref[...].astype(jnp.float32)
    o_ref[...] = (jnp.sum(x, axis=axis) * inv).astype(o_ref.dtype)


def _pick_row_tile(rows, d, itemsize, max_block_bytes=4 * 1024 * 1024):
    """Largest row tile that divides `rows`, is a multiple of 8 (or full),
    and keeps one input block under `max_block_bytes`."""
    if d * rows * _LANE * itemsize <= max_block_bytes:
        return rows
    cap = max(1, max_block_bytes // (d * _LANE * itemsize))
    best = None
    t = _SUBLANE
    while t <= min(rows, cap):
        if rows % t == 0:
            best = t
        t += _SUBLANE
    return best if best is not None else rows


def my_pool(x: jax.Array, dim: int, length) -> jax.Array:
    """Pallas TPU equivalent of MyPool(dim, length): sum(x, dim) / length."""
    dim = dim % x.ndim
    shape = x.shape
    out_shape = shape[:dim] + shape[dim + 1:]

    pre = int(math.prod(shape[:dim]))          # leading dims collapsed
    d = int(shape[dim])                        # reduction extent
    post = int(math.prod(shape[dim + 1:]))     # trailing dims collapsed

    inv = 1.0 / float(length)
    itemsize = jnp.dtype(x.dtype).itemsize

    if post % _LANE == 0 and post > 0:
        # Lane-dense path: trailing dims -> (rows, 128); reduction dim stays leading.
        rows = post // _LANE
        t_rows = _pick_row_tile(rows, d, itemsize)
        x_r = x.reshape(pre, d, rows, _LANE)
        grid = (pre, rows // t_rows)
        out = pl.pallas_call(
            partial(_sum_scale_kernel, inv=inv, axis=0),
            out_shape=jax.ShapeDtypeStruct((pre, rows, _LANE), x.dtype),
            grid=grid,
            in_specs=[
                pl.BlockSpec((None, d, t_rows, _LANE), lambda i, r: (i, 0, r, 0)),
            ],
            out_specs=pl.BlockSpec((None, t_rows, _LANE), lambda i, r: (i, r, 0)),
            compiler_params=pltpu.CompilerParams(
                dimension_semantics=("parallel", "parallel"),
            ),
        )(x_r)
    else:
        # Fallback for trailing extents not divisible by 128: one full
        # (d, post) block per leading index (block dims == full array dims).
        x_r = x.reshape(pre, d, post)
        out = pl.pallas_call(
            partial(_sum_scale_kernel, inv=inv, axis=1),
            out_shape=jax.ShapeDtypeStruct((pre, post), x.dtype),
            grid=(pre,),
            in_specs=[pl.BlockSpec((1, d, post), lambda i: (i, 0, 0))],
            out_specs=pl.BlockSpec((1, post), lambda i: (i, 0)),
            compiler_params=pltpu.CompilerParams(
                dimension_semantics=("parallel",),
            ),
        )(x_r)

    return out.reshape(out_shape)


if __name__ == "__main__":
    key = jax.random.PRNGKey(0)
    N, C, H, W = 2, 4, 16, 16
    dim, length = 1, 4  # MyPool(dim=1, length=4)

    x = jax.random.normal(key, (N, C, H, W), dtype=jnp.float32)

    out = jax.block_until_ready(my_pool(x, dim=dim, length=length))

    # reference check (plain JAX, mirrors th.sum(input, dim) / length)
    ref = jnp.sum(x, axis=dim) / length
    assert out.shape == ref.shape == (N, H, W)
    assert jnp.allclose(out, ref, atol=1e-6, rtol=1e-6)

    print("KERNEL_OK")
</pallas_src>

<mosaic_0001>
module attributes {stable_mosaic.version = 11 : i64} {
  func.func @_sum_scale_kernel(%arg0: i32, %arg1: i32, %arg2: memref<1x4x2x128xf32, #tpu.memory_space<vmem>>, %arg3: memref<1x2x128xf32, #tpu.memory_space<vmem>>) attributes {dimension_semantics = [#tpu.dimension_semantics<parallel>, #tpu.dimension_semantics<parallel>], iteration_bounds = array<i64: 2, 1>, scalar_prefetch = 0 : i64, scratch_operands = 0 : i64, tpu.core_type = #tpu.core_type<tc>, window_params = [{transform_indices = @transform_0, window_bounds = array<i64: 1, 4, 2, 128>}, {transform_indices = @transform_1, window_bounds = array<i64: 1, 2, 128>}]} {
    %c0 = arith.constant 0 : index
    %c0_0 = arith.constant 0 : index
    %c0_1 = arith.constant 0 : index
    %c0_2 = arith.constant 0 : index
    %0 = vector.load %arg2[%c0, %c0_0, %c0_1, %c0_2] : memref<1x4x2x128xf32, #tpu.memory_space<vmem>>, vector<1x4x2x128xf32>
    %1 = vector.shape_cast %0 : vector<1x4x2x128xf32> to vector<4x2x128xf32>
    %cst = arith.constant dense<0.000000e+00> : vector<2x128xf32>
    %2 = vector.multi_reduction <add>, %1, %cst [0] : vector<4x2x128xf32> to vector<2x128xf32>
    %cst_3 = arith.constant 2.500000e-01 : f32
    %3 = vector.broadcast %cst_3 : f32 to vector<2x128xf32>
    %4 = arith.mulf %2, %3 : vector<2x128xf32>
    %c0_4 = arith.constant 0 : index
    %c0_5 = arith.constant 0 : index
    %c0_6 = arith.constant 0 : index
    %5 = vector.load %arg3[%c0_4, %c0_5, %c0_6] : memref<1x2x128xf32, #tpu.memory_space<vmem>>, vector<1x2x128xf32>
    %6 = vector.shape_cast %5 : vector<1x2x128xf32> to vector<2x128xf32>
    %7 = vector.shape_cast %4 : vector<2x128xf32> to vector<1x2x128xf32>
    tpu.vector_store %arg3[%c0_4, %c0_5, %c0_6], %7 {strides = array<i32>} : memref<1x2x128xf32, #tpu.memory_space<vmem>>, vector<1x2x128xf32>,
    return
  }
  func.func @transform_0(%arg0: i32, %arg1: i32) -> (i32, i32, i32, i32) {
    %c0_i32 = arith.constant 0 : i32
    %c0_i32_0 = arith.constant 0 : i32
    %c0_i32_1 = arith.constant 0 : i32
    return %arg0, %c0_i32, %arg1, %c0_i32_0 : i32, i32, i32, i32
  }
  func.func @transform_1(%arg0: i32, %arg1: i32) -> (i32, i32, i32) {
    %c0_i32 = arith.constant 0 : i32
    %c0_i32_0 = arith.constant 0 : i32
    return %arg0, %arg1, %c0_i32 : i32, i32, i32
  }
}

</mosaic_0001>

<bundles_post_ra>
// kernel: tpu_custom_call.1
= control target key start
LH: loop header
LB: loop body
LE: loop exit
PB: predicated region body
PF: predicated region fallthrough
CT: control target
= control target key end

     0   :  { %6 = vsyncpa [#allocation3], 0  ;;  %s598_s0 = inlined_call_operand.hbm [shape: f32[2,4,2,128], index: 0, kind: input, shape index: {}]   ;;  %s599_s1 = inlined_call_operand.hbm [shape: f32[2,2,128], index: 1, kind: output, shape index: {}]  }
   0x1   :  { %8 = vsyncpa [#allocation3 + $0x1], 0 }
   0x2   :  { %9 = vsyncpa [#allocation4], 0 }
   0x3   :  { %11 = vsyncpa [#allocation4 + $0x1], 0  ;;  %s465_s6 = smov 0   ;;  %s467_s7 = smov 0  }
   0x4   :  { %s469_s8 = smov 0   ;;  %s471_s9 = smov 0  }
   0x5   :  { %s473_s10 = smov 0   ;;  %s475_s11 = smov 0  }
   0x6 LB: > { %s262_s12 = sadd.s32 4294967295, %s449_s11   ;;  %s263_s13 = sadd.s32 4294967294, %s449_s11   ;;  %s449_s11 = sphi %s475_s11, %s17_s11   ;;  %s445_s10 = sphi %s473_s10, %s610_s10   ;;  %s441_s9 = sphi %s471_s9, %s609_s9   ;;  %s437_s8 = sphi %s469_s8, %s608_s8   ;;  %s433_s7 = sphi %s467_s7, %s607_s7   ;;  %s429_s6 = sphi %s465_s6, %s606_s6  }
   0x7   : > { %s29_s14 = sadd.s32 1, %s445_s10  ;;  %s38_s15 = sadd.s32 1, %s437_s8 }
   0x8   : > { %p31_p0 = scmp.ge.s32.totalorder %s29_s14, 2  ;;  %p45_p1 = scmp.ne.s32.totalorder %s437_s8, %s433_s7 }
   0x9   : > { %p46_p2 = scmp.eq.s32.totalorder %s449_s11, 0  ;;  %p51_p3 = scmp.ne.s32.totalorder %s433_s7, %s429_s6 }
   0xa   : > { %s612_s14 = smov (%p31_p0, %s29_s14), 0  ;;  %p52_p5 = scmp.eq.s32.totalorder %s262_s12, 0 }
   0xb   : > { %p506_p4 = por %p46_p2, %p45_p1  ;;  %s33_s17 = ssub.s32 %s445_s10, %s612_s14 }
   0xc   : > { %p77_p6 = scmp.eq.s32.totalorder %s262_s12, 1  ;;  %p36_p7 = scmp.eq.s32.totalorder %s33_s17, 0 }
   0xd   : > { %p512_p8 = por %p52_p5, %p51_p3  ;;  %p83_p10 = scmp.eq.s32.totalorder %s263_s13, 1 }
   0xe   : > { %p516_p9 = por %p77_p6, %p45_p1  ;;  %p289_p13 = scmp.lt.s32.totalorder %s449_s11, 2 }
   0xf   : > { %s521_s20 = scalar_select %p36_p7, %s437_s8, %s38_s15  }
  0x10   : > { %p523_p11 = por %p83_p10, %p51_p3  ;;  %s103_s22 = sand.u32 1, %s437_s8  }
  0x11   : > { %s266_s23 = sshll.u32 %s103_s22, 3  ;;  %s276_s24 = sshll.u32 %s445_s10, 7 }
  0x12   : > { %s114_s27 = scalar_lea.hbm %s598_s0, %s276_s24  ;;  %s107_s28 = scalar_lea.vmem [#allocation2], %s266_s23 }
  0x13   : > { %s115_s29 = sshll.u32 %s107_s28, 4  ;;  %p536_p0 = pnand %p289_p13, %p506_p4  ;;  %s116_s29 = int_to_ptr.vmem [resolvable:$true] %s115_s29 }
  0x14   : > { %p269_p1 = scmp.ge.s32.totalorder %s449_s11, 1  ;;  %s104_s2 = scalar_lea.sflag [#allocation3], %s103_s22 }
  0x15   : > { %p343_p2 = pneg %p536_p0  ;;  %s354_s3 = scalar_lea.vmem %s116_s29, 128 }
  0x16   : > { %p355_p3 = scmp.ne.s32.totalorder %s116_s29, %s354_s3  ;;  %s451_s4 = smov [#allocation2]  }
  0x17   : > { %s359_s5 = sshll.u32 %s451_s4, 4  ;;  %s360_s5 = int_to_ptr.vmem [resolvable:$false] %s359_s5 }
  0x18   : > { %p357_p5 = pnand %p355_p3, %p343_p2  ;;  %s361_s12 = scalar_lea.vmem %s360_s5, 256 }
  0x19   : > { %p362_p7 = scmp.lt.s32.totalorder %s116_s29, %s360_s5  ;;  %p363_p10 = scmp.lt.s32.totalorder %s361_s12, %s354_s3 }
  0x1a   : > { %p358_p6 = pneg %p357_p5 }
  0x1b   : > { %p364_p12 = por %p363_p10, %p362_p7 }
  0x1d   : > { %p365_p4 = pnand %p364_p12, %p358_p6 }
  0x1f   : > { %368 = shalt.err (!%p365_p4)
}
  0x20   : > { %s452_s13 = smov 32   ;;  %s453_s15 = smov 2  }
  0x21   : > { %284 = dma.hbm_to_vmem [thread:$0]  (!%p536_p0), %s114_s27, 128, %s116_s29, %s104_s2, %s452_s13, %s452_s13, %s453_s15  }
  0x22   : > { %p123_p13 = scmp.lt.s32.totalorder %s449_s11, 3 }
  0x24   : > { %p124_p2 = pnand %p269_p1, %p123_p13 }
  0x25   : > { %s549_s16 = sand.u32 (!%p124_p2), 1, %s433_s7  }
  0x26   : > { %127 = sbr.rel (%p124_p2) target bundleno = 69 (0x45), region = 24  ;;  %s270_s17 = sshll.u32 (!%p124_p2), %s549_s16, 3 }
  0x27   : > { %s130_s22 = scalar_lea.sflag (!%p124_p2), [#allocation3], %s549_s16  ;;  %s133_s23 = scalar_lea.vmem (!%p124_p2), [#allocation2], %s270_s17 }
  0x2b   : > { %420 = dma.done.wait (%p512_p8), %s130_s22, 128  }
  0x2c   : > { %422 = vsyncadd (%p512_p8), %s130_s22, 4294967168  ;;  %vm156_vm0 = vcmask 1041408   ;;  %s271_s24 = sshll.u32 %s549_s16, 1  ;;  %v152_v0 = vld [vmem:[%s133_s23] sm:$0x3]  ;;  %s273_s18 = sshll.u32 %s441_s9, 5 }
  0x2d   : > { %v153_v1 = vld [vmem:[%s133_s23 + $0x2] sm:$0x3]  ;;  %v154_v2 = vld [vmem:[%s133_s23 + $0x4] sm:$0x3]  ;;  %v155_v3 = vld [vmem:[%s133_s23 + $0x6] sm:$0x3]  ;;  %s179_s29 = scalar_lea.hbm %s599_s1, %s273_s18 }
  0x2e   : > { %v157_v4 = vsel %vm156_vm0, %v152_v0, 0.0  ;;  %v158_v5 = vsel %vm156_vm0, %v153_v1, 0.0  ;;  %v160_v6 = vsel %vm156_vm0, %v154_v2, 0.0  ;;  %v162_v8 = vsel %vm156_vm0, %v155_v3, 0.0  ;;  %s151_s25 = scalar_lea.vmem [#allocation5], %s271_s24  ;;  %s167_s30 = scalar_lea.sflag [#allocation4], %s549_s16 }
  0x2f   : > { %v159_v7 = vadd.f32 %v158_v5, %v157_v4  ;;  %s181_s26 = sshll.u32 %s151_s25, 4  ;;  %s454_s3 = smov [#allocation5]   ;;  %s182_s26 = int_to_ptr.vmem [resolvable:$true] %s181_s26 }
  0x30   : > { %s369_s2 = scalar_lea.vmem %s182_s26, 32  ;;  %s373_s4 = sshll.u32 %s454_s3, 4  ;;  %s374_s4 = int_to_ptr.vmem [resolvable:$false] %s373_s4 }
  0x31   : > { %v161_v9 = vadd.f32 %v160_v6, %v159_v7  ;;  %p370_p8 = scmp.ne.s32.totalorder %s182_s26, %s369_s2  ;;  %s375_s5 = scalar_lea.vmem %s374_s4, 64 }
  0x32   : > { %p376_p1 = scmp.lt.s32.totalorder %s182_s26, %s374_s4  ;;  %p377_p3 = scmp.lt.s32.totalorder %s375_s5, %s369_s2 }
  0x33   : > { %v163_v10 = vadd.f32 %v162_v8, %v161_v9  ;;  %p371_p12 = pnand %p370_p8, %p516_p9 }
  0x34   : > { %p378_p5 = por %p377_p3, %p376_p1 }
  0x35   : > { %v164_v11 = vmul.f32 0.25, %v163_v10  ;;  %p372_p0 = pneg %p371_p12 }
  0x37   : > { %165 = vst [vmem:[%s151_s25] sm:$0x3] %v164_v11  ;;  %p379_p6 = pnand %p378_p5, %p372_p0 }
  0x39   : > { %382 = shalt.err (!%p379_p6)
}
  0x3a   : > { %s383_s9 = scalar_lea.hbm %s179_s29, 32  ;;  %s387_s15 = scalar_lea.hbm %s599_s1, 64 }
  0x3b   : > { %p384_p7 = scmp.ne.s32.totalorder %s179_s29, %s383_s9  ;;  %p388_p13 = scmp.lt.s32.totalorder %s179_s29, %s599_s1 }
  0x3c   : > { %p389_p2 = scmp.lt.s32.totalorder %s387_s15, %s383_s9 }
  0x3d   : > { %p385_p10 = pnand %p384_p7, %p516_p9 }
  0x3e   : > { %p390_p8 = por %p389_p2, %p388_p13 }
  0x3f   : > { %p386_p4 = pneg %p385_p10 }
  0x41   : > { %p391_p12 = pnand %p390_p8, %p386_p4 }
  0x43   : > { %394 = shalt.err (!%p391_p12)
}
  0x44   : > { %279 = dma.vmem_to_hbm [thread:$0]  (%p516_p9), %s182_s26, 32, %s179_s29, %s167_s30  }
  0x45 PF: > { %s193_s22 = sand.u32 1, %s429_s6   ;;  %p605_p0 = scmp.ge.s32.totalorder %s449_s11, 2 }
  0x46   : > { %s194_s23 = scalar_lea.sflag [#allocation4], %s193_s22 }
  0x47   : > { %p286_p1 = pnand %p605_p0, %p523_p11 }
  0x49   : > { %p287_p3 = pneg %p286_p1 }
  0x4b   : > { %424 = dma.done.wait (%p287_p3), %s194_s23, 32  }
  0x4c   : > { %426 = vsyncadd (%p287_p3), %s194_s23, 4294967264  ;;  %s17_s11 = sadd.s32 1, %s449_s11   ;;  %s606_s6 = smov %s433_s7 }
  0x4d   : > { %p14_p5 = scmp.ge.s32.totalorder %s17_s11, 4   ;;  %s607_s7 = smov %s437_s8 }
  0x4e   : > { %s608_s8 = smov %s521_s20  ;;  %s609_s9 = smov %s445_s10 }
  0x4f   : > { %s610_s10 = smov %s612_s14  ;;  %16 = sbr.rel (!%p14_p5) target bundleno = 6 (0x6), region = 69 }
  0x54   :  { %199 = vsyncpa [#allocation3], 1 }
  0x55   :  { %201 = vsyncpa [#allocation3 + $0x1], 1 }
  0x56   :  { %202 = vsyncpa [#allocation4], 1 }
  0x57   :  { %204 = vsyncpa [#allocation4 + $0x1], 1 }

</bundles_post_ra>
